<compile_context>
chip_gen: v5e
topology: v5e:2x2
jax: 0.10.0
libtpu: 0.0.40
codegen_flags: <defaults>
</compile_context>

<pallas_src>
import math
import functools

import jax
import jax.numpy as jnp
from jax import lax
from jax.experimental import pallas as pl
from jax.experimental.pallas import tpu as pltpu


def _round_up(x, n):
    return ((x + n - 1) // n) * n


def _arcface_kernel(label_ref, feat_ref, w_ref, invw_ref, out_ref, *,
                    s, cos_m, sin_m, th, mm, tile_c):
    # feat_ref: (TB, D)  mxu dtype, rows already L2-normalized
    # w_ref:    (TC, D)  mxu dtype, raw rows (row norm folded into invw)
    # invw_ref: (1, TC)  f32, 0.0 for padded classes
    raw = lax.dot_general(
        feat_ref[...], w_ref[...],
        dimension_numbers=(((1,), (1,)), ((), ())),
        preferred_element_type=jnp.float32)                      # (TB, TC)
    cos_theta = raw * invw_ref[...]

    # cos(theta + m) = cos*cos_m - sqrt(max(1 - cos^2, 0))*sin_m
    sin_theta = jnp.sqrt(jnp.maximum(1.0 - cos_theta * cos_theta, 0.0))
    cos_theta_m = cos_theta * cos_m - sin_theta * sin_m
    marginal = jnp.where(cos_theta > th, cos_theta_m, cos_theta - mm)

    # One-hot via local iota vs (label - tile_start): no full-tile add.
    local_label = label_ref[...] - pl.program_id(0) * tile_c     # (TB, 1) int32
    col_ids = lax.broadcasted_iota(jnp.int32, cos_theta.shape, 1)
    one_hot = col_ids == local_label
    out_ref[...] = (jnp.where(one_hot, marginal, cos_theta) * s).astype(out_ref.dtype)


def _cos_kernel(feat_ref, w_ref, invw_ref, out_ref):
    raw = lax.dot_general(
        feat_ref[...], w_ref[...],
        dimension_numbers=(((1,), (1,)), ((), ())),
        preferred_element_type=jnp.float32)
    out_ref[...] = (raw * invw_ref[...]).astype(out_ref.dtype)


def prepare_arcface_weight(weight, *, eps=1e-12, mxu_dtype=jnp.bfloat16, c_pad=None):
    """One-time weight prep: (C_pad, D) mxu-dtype weight + (1, C_pad) f32 1/||w_row||.

    Cache the result across training steps; the weight is reused for many batches.
    """
    C, _ = weight.shape
    if c_pad is None:
        c_pad = C
    w32 = weight.astype(jnp.float32)
    inv_w = 1.0 / jnp.maximum(jnp.linalg.norm(w32, axis=1), eps)          # (C,)
    inv_w = jnp.pad(inv_w, (0, c_pad - C)).reshape(1, c_pad)              # padded -> 0
    w_p = jnp.pad(w32.astype(mxu_dtype), ((0, c_pad - C), (0, 0)))        # (C_pad, D)
    return w_p, inv_w.astype(jnp.float32)


def arcface_forward(feature, weight, label=None, s=30.0, m=0.5, eps=1e-12,
                    mxu_dtype=jnp.bfloat16, out_dtype=jnp.float32,
                    tile_b=512, tile_c=2048):
    """ArcFace forward. feature: (B, D) f32, weight: (C, D) f32, label: (B,) int or None."""
    B, D = feature.shape
    C, D2 = weight.shape
    assert D == D2

    itemsize = jnp.dtype(mxu_dtype).itemsize
    sublane_pack = {4: 8, 2: 16, 1: 32}.get(itemsize, 8)
    tb = min(tile_b, _round_up(B, sublane_pack))
    tc = min(tile_c, _round_up(C, 128))
    b_pad = _round_up(B, tb)
    c_pad = _round_up(C, tc)

    # Features: L2-normalize in f32, fuse the normalization into the cast, pad rows.
    f32 = feature.astype(jnp.float32)
    inv_f = lax.rsqrt(jnp.maximum(jnp.sum(f32 * f32, axis=1, keepdims=True),
                                  eps * eps))
    feat_p = jnp.pad((f32 * inv_f).astype(mxu_dtype), ((0, b_pad - B), (0, 0)))

    # Weights: row norms from f32, narrow-dtype operand, no transpose.
    # TODO(synk): cache (w_p, inv_w) across steps in a real training loop.
    w_p, inv_w = prepare_arcface_weight(weight, eps=eps, mxu_dtype=mxu_dtype,
                                        c_pad=c_pad)

    # Grid: C tiles OUTER, B tiles INNER -> weight block index constant across
    # consecutive steps (kept resident); class axis is the megacore-parallel one.
    grid = (c_pad // tc, b_pad // tb)
    out_itemsize = jnp.dtype(out_dtype).itemsize
    cost = pl.CostEstimate(
        flops=2 * b_pad * c_pad * D,
        transcendentals=0 if label is None else b_pad * c_pad,
        bytes_accessed=(c_pad * D * itemsize
                        + (c_pad // tc) * b_pad * D * itemsize
                        + b_pad * c_pad * out_itemsize),
    )
    tile_bytes = (2 * (tc * D * itemsize + tb * D * itemsize + tb * tc * out_itemsize)
                  + 4 * tb * tc * 4)      # double-buffered blocks + f32 epilogue temps
    cparams = pltpu.CompilerParams(
        dimension_semantics=("parallel", "arbitrary"),
        vmem_limit_bytes=int(min(max(tile_bytes, 32 * 1024 * 1024),
                                 48 * 1024 * 1024)),
    )

    feat_spec = pl.BlockSpec((tb, D), lambda j, i: (i, 0))
    w_spec = pl.BlockSpec((tc, D), lambda j, i: (j, 0))
    invw_spec = pl.BlockSpec((1, tc), lambda j, i: (0, j))
    out_spec = pl.BlockSpec((tb, tc), lambda j, i: (i, j))

    if label is None:
        out = pl.pallas_call(
            _cos_kernel,
            out_shape=jax.ShapeDtypeStruct((b_pad, c_pad), out_dtype),
            grid=grid,
            in_specs=[feat_spec, w_spec, invw_spec],
            out_specs=out_spec,
            compiler_params=cparams,
            cost_estimate=cost,
        )(feat_p, w_p, inv_w)
    else:
        cos_m = math.cos(m)
        sin_m = math.sin(m)
        th = math.cos(math.pi - m)
        mm = math.sin(math.pi - m) * m

        # Padded rows get label = -1 so the one-hot never fires on them.
        label2d = jnp.pad(label.astype(jnp.int32).reshape(B, 1),
                          ((0, b_pad - B), (0, 0)), constant_values=-1)

        kernel = functools.partial(_arcface_kernel, s=s, cos_m=cos_m, sin_m=sin_m,
                                   th=th, mm=mm, tile_c=tc)
        out = pl.pallas_call(
            kernel,
            out_shape=jax.ShapeDtypeStruct((b_pad, c_pad), out_dtype),
            grid=grid,
            in_specs=[pl.BlockSpec((tb, 1), lambda j, i: (i, 0)),   # label
                      feat_spec, w_spec, invw_spec],
            out_specs=out_spec,
            compiler_params=cparams,
            cost_estimate=cost,
        )(label2d, feat_p, w_p, inv_w)

    if b_pad != B or c_pad != C:
        out = out[:B, :C]     # avoided entirely when tiles divide (B, C)
    return out


def _reference(feature, weight, label, s=30.0, m=0.5, eps=1e-12):
    f = feature / jnp.maximum(jnp.linalg.norm(feature, axis=1, keepdims=True), eps)
    w = weight / jnp.maximum(jnp.linalg.norm(weight, axis=1, keepdims=True), eps)
    cos_theta = jnp.dot(f, w.T, precision=lax.Precision.HIGHEST)
    if label is None:
        return cos_theta
    theta = jnp.arccos(jnp.clip(cos_theta, -1.0, 1.0))
    marg = jnp.cos(theta + m)
    th = math.cos(math.pi - m)
    mm = math.sin(math.pi - m) * m
    marg = jnp.where(cos_theta > th, marg, cos_theta - mm)
    one_hot = jax.nn.one_hot(label, cos_theta.shape[1], dtype=cos_theta.dtype)
    return (one_hot * marg + (1.0 - one_hot) * cos_theta) * s


if __name__ == "__main__":
    # Small deterministic setup consistent with the module:
    # in_features=32, out_features=16, batch=8.
    B, IN, OUT = 8, 32, 16
    s_val, m_val = 30.0, 0.5

    key = jax.random.PRNGKey(0)
    k_feat, k_w, k_lbl = jax.random.split(key, 3)

    feature = jax.random.normal(k_feat, (B, IN), dtype=jnp.float32)

    # xavier_uniform_ init for weight of shape (out_features, in_features)
    bound = math.sqrt(6.0 / (IN + OUT))
    weight = jax.random.uniform(k_w, (OUT, IN), dtype=jnp.float32,
                                minval=-bound, maxval=bound)
    label = jax.random.randint(k_lbl, (B,), 0, OUT, dtype=jnp.int32)

    ref = _reference(feature, weight, label, s=s_val, m=m_val)

    # Exact-semantics path (f32 MXU operands): tight check of tiling /
    # local one-hot / margin math / padded-class masking.
    score_f32 = jax.block_until_ready(
        arcface_forward(feature, weight, label, s=s_val, m=m_val,
                        mxu_dtype=jnp.float32))
    assert score_f32.shape == (B, OUT)
    assert jnp.allclose(score_f32, ref, atol=5e-3, rtol=5e-3), "f32 path mismatch"

    # Default fast path (bf16 MXU operands, f32 accumulation): looser tolerance
    # purely from bf16 operand quantization.
    score_bf16 = jax.block_until_ready(
        arcface_forward(feature, weight, label, s=s_val, m=m_val))
    assert score_bf16.shape == (B, OUT)
    assert jnp.allclose(score_bf16, ref, atol=8e-2, rtol=8e-2), "bf16 path mismatch"

    # label=None path returns cos_theta.
    cos_ref = _reference(feature, weight, None)
    cos_out = jax.block_until_ready(
        arcface_forward(feature, weight, None, mxu_dtype=jnp.float32))
    assert cos_out.shape == (B, OUT)
    assert jnp.allclose(cos_out, cos_ref, atol=5e-3, rtol=5e-3), "cos path mismatch"

    print("KERNEL_OK")
</pallas_src>

<mosaic_0001>
module attributes {stable_mosaic.version = 11 : i64} {
  func.func @_arcface_kernel(%arg0: i32, %arg1: i32, %arg2: memref<8x1xi32, #tpu.memory_space<vmem>>, %arg3: memref<8x32xf32, #tpu.memory_space<vmem>>, %arg4: memref<128x32xf32, #tpu.memory_space<vmem>>, %arg5: memref<1x128xf32, #tpu.memory_space<vmem>>, %arg6: memref<8x128xf32, #tpu.memory_space<vmem>>) attributes {dimension_semantics = [#tpu.dimension_semantics<parallel>, #tpu.dimension_semantics<arbitrary>], iteration_bounds = array<i64: 1, 1>, scalar_prefetch = 0 : i64, scratch_operands = 0 : i64, tpu.core_type = #tpu.core_type<tc>, window_params = [{transform_indices = @transform_0, window_bounds = array<i64: 8, 1>}, {transform_indices = @transform_1, window_bounds = array<i64: 8, 32>}, {transform_indices = @transform_2, window_bounds = array<i64: 128, 32>}, {transform_indices = @transform_3, window_bounds = array<i64: 1, 128>}, {transform_indices = @transform_4, window_bounds = array<i64: 8, 128>}]} {
    %c0 = arith.constant 0 : index
    %c0_0 = arith.constant 0 : index
    %0 = vector.load %arg3[%c0, %c0_0] : memref<8x32xf32, #tpu.memory_space<vmem>>, vector<8x32xf32>
    %c0_1 = arith.constant 0 : index
    %c0_2 = arith.constant 0 : index
    %1 = vector.load %arg4[%c0_1, %c0_2] : memref<128x32xf32, #tpu.memory_space<vmem>>, vector<128x32xf32>
    %cst = arith.constant dense<0.000000e+00> : vector<8x128xf32>
    %2 = tpu.matmul %0, %1, %cst {dimension_numbers = #tpu.dot_dimension_numbers<[1], [1], [0], [0], [0, 0, 1, 0], [], []>} : vector<8x32xf32>, vector<128x32xf32>, vector<8x128xf32> -> vector<8x128xf32>
    %c0_3 = arith.constant 0 : index
    %c0_4 = arith.constant 0 : index
    %3 = vector.load %arg5[%c0_3, %c0_4] : memref<1x128xf32, #tpu.memory_space<vmem>>, vector<1x128xf32>
    %4 = vector.broadcast %3 : vector<1x128xf32> to vector<8x128xf32>
    %5 = arith.mulf %2, %4 : vector<8x128xf32>
    %6 = arith.mulf %5, %5 : vector<8x128xf32>
    %cst_5 = arith.constant 1.000000e+00 : f32
    %7 = vector.broadcast %cst_5 : f32 to vector<8x128xf32>
    %8 = arith.subf %7, %6 : vector<8x128xf32>
    %cst_6 = arith.constant 0.000000e+00 : f32
    %9 = vector.broadcast %cst_6 : f32 to vector<8x128xf32>
    %10 = arith.maximumf %8, %9 : vector<8x128xf32>
    %11 = math.sqrt %10 : vector<8x128xf32>
    %cst_7 = arith.constant 0.87758255 : f32
    %12 = vector.broadcast %cst_7 : f32 to vector<8x128xf32>
    %13 = arith.mulf %5, %12 : vector<8x128xf32>
    %cst_8 = arith.constant 0.47942555 : f32
    %14 = vector.broadcast %cst_8 : f32 to vector<8x128xf32>
    %15 = arith.mulf %11, %14 : vector<8x128xf32>
    %16 = arith.subf %13, %15 : vector<8x128xf32>
    %cst_9 = arith.constant -0.87758255 : f32
    %17 = vector.broadcast %cst_9 : f32 to vector<8x128xf32>
    %18 = arith.cmpf ogt, %5, %17 : vector<8x128xf32>
    %cst_10 = arith.constant 0.239712775 : f32
    %19 = vector.broadcast %cst_10 : f32 to vector<8x128xf32>
    %20 = arith.subf %5, %19 : vector<8x128xf32>
    %21 = arith.select %18, %16, %20 : vector<8x128xi1>, vector<8x128xf32>
    %c0_11 = arith.constant 0 : index
    %c0_12 = arith.constant 0 : index
    %22 = vector.load %arg2[%c0_11, %c0_12] : memref<8x1xi32, #tpu.memory_space<vmem>>, vector<8x1xi32>
    %c128_i32 = arith.constant 128 : i32
    %23 = arith.muli %arg0, %c128_i32 : i32
    %24 = vector.broadcast %23 : i32 to vector<8x1xi32>
    %25 = arith.subi %22, %24 : vector<8x1xi32>
    %26 = tpu.iota {dimensions = array<i32: 1>} : vector<8x128xi32>
    %27 = vector.broadcast %25 : vector<8x1xi32> to vector<8x128xi32>
    %28 = arith.cmpi eq, %26, %27 : vector<8x128xi32>
    %29 = arith.select %28, %21, %5 : vector<8x128xi1>, vector<8x128xf32>
    %cst_13 = arith.constant 3.000000e+01 : f32
    %30 = vector.broadcast %cst_13 : f32 to vector<8x128xf32>
    %31 = arith.mulf %29, %30 : vector<8x128xf32>
    %c0_14 = arith.constant 0 : index
    %c0_15 = arith.constant 0 : index
    %32 = vector.load %arg6[%c0_14, %c0_15] : memref<8x128xf32, #tpu.memory_space<vmem>>, vector<8x128xf32>
    tpu.vector_store %arg6[%c0_14, %c0_15], %31 {strides = array<i32>} : memref<8x128xf32, #tpu.memory_space<vmem>>, vector<8x128xf32>,
    return
  }
  func.func @transform_0(%arg0: i32, %arg1: i32) -> (i32, i32) {
    %c0_i32 = arith.constant 0 : i32
    %c0_i32_0 = arith.constant 0 : i32
    return %arg1, %c0_i32 : i32, i32
  }
  func.func @transform_1(%arg0: i32, %arg1: i32) -> (i32, i32) {
    %c0_i32 = arith.constant 0 : i32
    %c0_i32_0 = arith.constant 0 : i32
    return %arg1, %c0_i32 : i32, i32
  }
  func.func @transform_2(%arg0: i32, %arg1: i32) -> (i32, i32) {
    %c0_i32 = arith.constant 0 : i32
    %c0_i32_0 = arith.constant 0 : i32
    return %arg0, %c0_i32 : i32, i32
  }
  func.func @transform_3(%arg0: i32, %arg1: i32) -> (i32, i32) {
    %c0_i32 = arith.constant 0 : i32
    %c0_i32_0 = arith.constant 0 : i32
    return %c0_i32, %arg0 : i32, i32
  }
  func.func @transform_4(%arg0: i32, %arg1: i32) -> (i32, i32) {
    %c0_i32 = arith.constant 0 : i32
    return %arg1, %arg0 : i32, i32
  }
}

</mosaic_0001>

<bundles_post_ra>
// kernel: tpu_custom_call.1
= control target key start
LH: loop header
LB: loop body
LE: loop exit
PB: predicated region body
PF: predicated region fallthrough
CT: control target
= control target key end

     0   :  { %vm35_vm0 = vcmask 261120   ;;  %s316_s0 = inlined_call_operand.vmem [shape: s32[8,1], index: 0, kind: input, shape index: {}]   ;;  %s317_s1 = inlined_call_operand.vmem [shape: f32[8,32], index: 1, kind: input, shape index: {}]   ;;  %s318_s2 = inlined_call_operand.vmem [shape: f32[128,32], index: 2, kind: input, shape index: {}]   ;;  %s319_s3 = inlined_call_operand.vmem [shape: f32[1,128], index: 3, kind: input, shape index: {}]   ;;  %s320_s4 = inlined_call_operand.hbm [shape: f32[8,128], index: 4, kind: output, shape index: {}]  }
   0x1   :  { %v34_v0 = vld [vmem:[%s318_s2 + $0x78] sm:$0xff]  ;;  %v33_v1 = vld [vmem:[%s318_s2 + $0x70] sm:$0xff] }
   0x2   :  { %162 = vmatpush.xpose.msk.msra.mxu0 %vm35_vm0, %v34_v0 }
   0x3   :  { %9 = vsyncpa [#allocation3], 0  ;;  %v32_v2 = vld [vmem:[%s318_s2 + $0x68] sm:$0xff]  ;;  %v31_v3 = vld [vmem:[%s318_s2 + $0x60] sm:$0xff]  ;;  %v212_v10 = vmov 0   ;;  %v137_v30 = vlaneseq  ;;  %s153_s27 = sshll.u32 %s320_s4, 4  ;;  %s154_s27 = int_to_ptr.hbm [resolvable:$true] %s153_s27 }
   0x4   :  { %v30_v4 = vld [vmem:[%s318_s2 + $0x58] sm:$0xff]  ;;  %v29_v5 = vld [vmem:[%s318_s2 + $0x50] sm:$0xff]  ;;  %v28_v6 = vld [vmem:[%s318_s2 + $0x48] sm:$0xff]  ;;  %182 = vset.pattern.permute.xlu0 %v212_v10 }
   0x5   :  { %v27_v7 = vld [vmem:[%s318_s2 + $0x40] sm:$0xff]  ;;  %v26_v8 = vld [vmem:[%s318_s2 + $0x38] sm:$0xff]  ;;  %v25_v11 = vld [vmem:[%s318_s2 + $0x30] sm:$0xff]  ;;  %v138_v34 = vand.u32 127, %v137_v30 }
   0x6   :  { %163 = vmatpush.xpose.msk.msra.mxu0 %vm35_vm0, %v33_v1  ;;  %v133_v9 = vld [vmem:[%s316_s0] sm:$0xff]  ;;  %v24_v12 = vld [vmem:[%s318_s2 + $0x28] sm:$0xff]  ;;  %v22_v14 = vld [vmem:[%s318_s2 + $0x18] sm:$0xff] }
   0x7   :  { %140 = vperm.xlu0 %182, %v133_v9   ;;  %v23_v13 = vld [vmem:[%s318_s2 + $0x20] sm:$0xff]  ;;  %v21_v15 = vld [vmem:[%s318_s2 + $0x10] sm:$0xff]  ;;  %v20_v16 = vld [vmem:[%s318_s2 + $0x8] sm:$0xff] }
   0x8   :  { %v19_v17 = vld [vmem:[%s318_s2] sm:$0xff] }
   0x9   :  { %v18_v18 = vld [vmem:[%s317_s1] sm:$0xff]  ;;  %s213_s1 = smov [#allocation2]  }
   0xa   :  { %164 = vmatpush.xpose.msk.msra.mxu0 %vm35_vm0, %v32_v2  ;;  %v183_v19 = vld [vmem:[%s319_s3] ss:$0 sm:$0xff]  ;;  %s151_s2 = sshll.u32 %s213_s1, 4  ;;  %s152_s2 = int_to_ptr.vmem [resolvable:$true] %s151_s2 }
   0xe   :  { %165 = vmatpush.xpose.msk.msra.mxu0 %vm35_vm0, %v31_v3 }
  0x12   :  { %166 = vmatpush.xpose.msk.msra.mxu0 %vm35_vm0, %v30_v4 }
  0x16   :  { %167 = vmatpush.xpose.msk.msra.mxu0 %vm35_vm0, %v29_v5 }
  0x1a   :  { %168 = vmatpush.xpose.msk.msra.mxu0 %vm35_vm0, %v28_v6 }
  0x1e   :  { %169 = vmatpush.xpose.msk.msra.mxu0 %vm35_vm0, %v27_v7 }
  0x22   :  { %170 = vmatpush.xpose.msk.msra.mxu0 %vm35_vm0, %v26_v8 }
  0x26   :  { %171 = vmatpush.xpose.msk.msra.mxu0 %vm35_vm0, %v25_v11 }
  0x2a   :  { %172 = vmatpush.xpose.msk.msra.mxu0 %vm35_vm0, %v24_v12 }
  0x2e   :  { %173 = vmatpush.xpose.msk.msra.mxu0 %vm35_vm0, %v23_v13 }
  0x32   :  { %174 = vmatpush.xpose.msk.msra.mxu0 %vm35_vm0, %v22_v14 }
  0x36   :  { %175 = vmatpush.xpose.msk.msra.mxu0 %vm35_vm0, %v21_v15 }
  0x3a   :  { %176 = vmatpush.xpose.msk.msra.mxu0 %vm35_vm0, %v20_v16 }
  0x3e   :  { %177 = vmatpush.xpose.msk.msra.mxu0 %vm35_vm0, %v19_v17 }
  0x41   :  { %178 = vmatmul.msk.f32.vlgmr.msra.gmra.mxu0 %vm35_vm0, %v18_v18 }
  0x79   :  { %v141_v36 = vpop.permute.xlu0 %140 }
  0x7a   :  { %vm142_vm3 = vcmp.eq.s32.totalorder %v138_v34, %v141_v36 }
  0xbe   :  { %v104_v20 = vpop.f32.mrf.mxu0 }
  0xbf   :  { %v111_v21 = vmul.f32 %v183_v19, %v104_v20 }
  0xc1   :  { %v112_v22 = vmul.f32 %v111_v21, %v111_v21  ;;  %v127_v38 = vmul.f32 0.87758255, %v111_v21  ;;  %v179_v41 = vadd.f32 -0.23971277, %v111_v21  ;;  %vm130_vm4 = vcmp.gt.f32.partialorder %v111_v21, -0.87758255 }
  0xc3   :  { %v113_v23 = vsub.f32 1.0, %v112_v22 }
  0xc5   :  { %v114_v24 = vmax.f32 %v113_v23, 0.0 }
  0xc7   :  { %184 = vrsqrt.f32 %v114_v24  ;;  %vm122_vm1 = vcmp.eq.f32.partialorder %v114_v24, inf  ;;  %v125_v33 = vand.u32 2147483648, %v114_v24  ;;  %vm124_vm2 = vcmp.eq.f32.partialorder %v114_v24, 0.0 }
  0xcd   :  { %v185_v25 = vpop.eup %184 }
  0xce   :  { %v116_v26 = vmul.f32 %v185_v25, %v114_v24 }
  0xd0   :  { %v117_v27 = vmul.f32 %v185_v25, %v116_v26 }
  0xd2   :  { %v118_v28 = vmul.f32 0.5, %v117_v27 }
  0xd4   :  { %v119_v29 = vsub.f32 1.5, %v118_v28 }
  0xd6   :  { %v120_v31 = vmul.f32 %v185_v25, %v119_v29 }
  0xd8   :  { %v121_v32 = vmul.f32 %v120_v31, %v114_v24 }
  0xda   :  { %v123_v35 = vsel %vm122_vm1, %v114_v24, %v121_v32 }
  0xdb   :  { %v126_v37 = vsel %vm124_vm2, %v125_v33, %v123_v35 }
  0xdc   :  { %v128_v39 = vmul.f32 0.47942555, %v126_v37 }
  0xde   :  { %v129_v40 = vsub.f32 %v127_v38, %v128_v39 }
  0xe0   :  { %v132_v42 = vsel %vm130_vm4, %v129_v40, %v179_v41 }
  0xe1   :  { %v143_v43 = vsel %vm142_vm3, %v132_v42, %v111_v21 }
  0xe2   :  { %v144_v44 = vmul.f32 30.0, %v143_v43 }
  0xe4   :  { %145 = vst [vmem:[#allocation2] sm:$0xff] %v144_v44 }
  0xe5   :  { %156 = dma.vmem_to_hbm [thread:$0]  %s152_s2, 128, %s154_s27, [#allocation3]  }
  0xe6   :  { %210 = dma.done.wait [#allocation3], 128  }
  0xe7   :  { %211 = vsyncadd [#allocation3], 4294967168 }
  0xe8   :  { %161 = vsyncpa [#allocation3], 1 }

</bundles_post_ra>
